<compile_context>
chip_gen: v6e
topology: v6e:2x2x1
jax: 0.10.0
libtpu: 0.0.40
codegen_flags: <defaults>
</compile_context>

<pallas_src>
import jax
import jax.numpy as jnp
from jax.experimental import pallas as pl
from jax.experimental.pallas import tpu as pltpu


def generator_kernel(z_ref, w1_ref, b1_ref, w2_ref, b2_ref, w3_ref, b3_ref,
                     out_ref):
    # z and weights arrive as bf16; accumulate fp32 on the MXU, do elementwise
    # math (bias / LeakyReLU / softmax) in fp32.
    z = z_ref[...]

    # Linear(latent_dim, 256) + LeakyReLU(0.2)
    h1 = jnp.dot(z, w1_ref[...], preferred_element_type=jnp.float32) + b1_ref[...]
    h1 = jnp.where(h1 > 0, h1, 0.2 * h1)

    # Linear(256, 512) + LeakyReLU(0.2)
    h2 = jnp.dot(h1.astype(jnp.bfloat16), w2_ref[...],
                 preferred_element_type=jnp.float32) + b2_ref[...]
    h2 = jnp.where(h2 > 0, h2, 0.2 * h2)

    # Linear(512, num_classes_padded).  Padded columns carry a -1e30 bias so
    # they vanish under softmax.
    logits = jnp.dot(h2.astype(jnp.bfloat16), w3_ref[...],
                     preferred_element_type=jnp.float32) + b3_ref[...]

    # Numerically stable softmax over dim=1 (feature axis).
    m = jnp.max(logits, axis=1, keepdims=True)
    e = jnp.exp(logits - m)
    inv = pl.reciprocal(jnp.sum(e, axis=1, keepdims=True), approx=True)
    out_ref[...] = (e * inv).astype(out_ref.dtype)


def generator_forward(z, w1, b1, w2, b2, w3, b3, *, block_b=512):
    B, K = z.shape
    num_classes = w3.shape[1]

    # --- host-side layout prep (one-time) -----------------------------------
    # Pad latent dim K (100) up to a multiple of 128 for lane-aligned MXU loads.
    K_pad = pl.cdiv(K, 128) * 128
    if K_pad != K:
        z = jnp.pad(z, ((0, 0), (0, K_pad - K)))
        w1 = jnp.pad(w1, ((0, K_pad - K), (0, 0)))

    # Pad num_classes up to a multiple of 128 so the output last dim is
    # lane-dense (unmasked stores) and the last matmul has a 128-wide N.
    # Padded columns: zero weights + -1e30 bias -> exactly 0 after softmax.
    N_pad = pl.cdiv(num_classes, 128) * 128
    if N_pad != num_classes:
        w3 = jnp.pad(w3, ((0, 0), (0, N_pad - num_classes)))
        b3 = jnp.pad(b3, ((0, 0), (0, N_pad - num_classes)),
                     constant_values=-1e30)

    # Batch tile: >= 8 (sublane aligned), capped at block_b for large batches.
    TB = block_b if B >= block_b else pl.cdiv(B, 8) * 8
    B_pad = pl.cdiv(B, TB) * TB
    if B_pad != B:
        z = jnp.pad(z, ((0, B_pad - B), (0, 0)))

    # bf16 for everything that feeds the MXU; biases stay fp32 (VPU path).
    z = z.astype(jnp.bfloat16)
    w1 = w1.astype(jnp.bfloat16)
    w2 = w2.astype(jnp.bfloat16)
    w3 = w3.astype(jnp.bfloat16)
    b1 = b1.astype(jnp.float32)
    b2 = b2.astype(jnp.float32)
    b3 = b3.astype(jnp.float32)

    def resident(shape):
        # Whole array, same block every grid step -> stays in VMEM, no re-DMA.
        return pl.BlockSpec(shape, lambda i: tuple(0 for _ in shape))

    out = pl.pallas_call(
        generator_kernel,
        out_shape=jax.ShapeDtypeStruct((B_pad, N_pad), jnp.float32),
        grid=(B_pad // TB,),
        in_specs=[
            pl.BlockSpec((TB, K_pad), lambda i: (i, 0)),   # z: batch-tiled
            resident(w1.shape), resident(b1.shape),
            resident(w2.shape), resident(b2.shape),
            resident(w3.shape), resident(b3.shape),
        ],
        out_specs=pl.BlockSpec((TB, N_pad), lambda i: (i, 0)),
        compiler_params=pltpu.CompilerParams(
            dimension_semantics=("parallel",)),
    )(z, w1, b1, w2, b2, w3, b3)

    return out[:B, :num_classes]


def init_params(key, latent_dim, num_classes):
    # Deterministic init mimicking PyTorch Linear default:
    # U(-1/sqrt(fan_in), 1/sqrt(fan_in)).
    ks = jax.random.split(key, 6)

    def lin(kw, kb, fan_in, fan_out):
        bound = 1.0 / jnp.sqrt(fan_in)
        w = jax.random.uniform(kw, (fan_in, fan_out), jnp.float32, -bound, bound)
        b = jax.random.uniform(kb, (1, fan_out), jnp.float32, -bound, bound)
        return w, b

    w1, b1 = lin(ks[0], ks[1], latent_dim, 256)
    w2, b2 = lin(ks[2], ks[3], 256, 512)
    w3, b3 = lin(ks[4], ks[5], 512, num_classes)
    return w1, b1, w2, b2, w3, b3


if __name__ == "__main__":
    latent_dim = 100
    num_classes = 10
    batch = 8

    key = jax.random.PRNGKey(0)
    kz, kp = jax.random.split(key)
    z = jax.random.normal(kz, (batch, latent_dim), jnp.float32)
    params = init_params(kp, latent_dim, num_classes)

    out = generator_forward(z, *params)
    out = jax.block_until_ready(out)

    # Reference: full-fp32 pure-JAX forward (PyTorch semantics).  The kernel
    # uses bf16 matmul operands + approx reciprocal, so tolerances are loose.
    w1, b1, w2, b2, w3, b3 = params
    h1 = z @ w1 + b1
    h1 = jnp.where(h1 > 0, h1, 0.2 * h1)
    h2 = h1 @ w2 + b2
    h2 = jnp.where(h2 > 0, h2, 0.2 * h2)
    ref = jax.nn.softmax(h2 @ w3 + b3, axis=1)

    assert out.shape == (batch, num_classes)
    assert jnp.allclose(jnp.sum(out, axis=1), 1.0, atol=1e-2)
    assert jnp.allclose(out, ref, atol=2e-2)

    print("KERNEL_OK")
</pallas_src>

<mosaic_0001>
module attributes {stable_mosaic.version = 11 : i64} {
  func.func @generator_kernel(%arg0: i32, %arg1: memref<8x128xbf16, #tpu.memory_space<vmem>>, %arg2: memref<128x256xbf16, #tpu.memory_space<vmem>>, %arg3: memref<1x256xf32, #tpu.memory_space<vmem>>, %arg4: memref<256x512xbf16, #tpu.memory_space<vmem>>, %arg5: memref<1x512xf32, #tpu.memory_space<vmem>>, %arg6: memref<512x128xbf16, #tpu.memory_space<vmem>>, %arg7: memref<1x128xf32, #tpu.memory_space<vmem>>, %arg8: memref<8x128xf32, #tpu.memory_space<vmem>>) attributes {dimension_semantics = [#tpu.dimension_semantics<parallel>], iteration_bounds = array<i64: 1>, scalar_prefetch = 0 : i64, scratch_operands = 0 : i64, tpu.core_type = #tpu.core_type<tc>, window_params = [{transform_indices = @transform_0, window_bounds = array<i64: 8, 128>}, {pipeline_mode = #tpu.pipeline_mode<synchronous>, transform_indices = @transform_1, window_bounds = array<i64: 128, 256>}, {pipeline_mode = #tpu.pipeline_mode<synchronous>, transform_indices = @transform_2, window_bounds = array<i64: 1, 256>}, {pipeline_mode = #tpu.pipeline_mode<synchronous>, transform_indices = @transform_3, window_bounds = array<i64: 256, 512>}, {pipeline_mode = #tpu.pipeline_mode<synchronous>, transform_indices = @transform_4, window_bounds = array<i64: 1, 512>}, {pipeline_mode = #tpu.pipeline_mode<synchronous>, transform_indices = @transform_5, window_bounds = array<i64: 512, 128>}, {pipeline_mode = #tpu.pipeline_mode<synchronous>, transform_indices = @transform_6, window_bounds = array<i64: 1, 128>}, {transform_indices = @transform_7, window_bounds = array<i64: 8, 128>}]} {
    %c0 = arith.constant 0 : index
    %c0_0 = arith.constant 0 : index
    %0 = vector.load %arg1[%c0, %c0_0] : memref<8x128xbf16, #tpu.memory_space<vmem>>, vector<8x128xbf16>
    %c0_1 = arith.constant 0 : index
    %c0_2 = arith.constant 0 : index
    %1 = vector.load %arg2[%c0_1, %c0_2] : memref<128x256xbf16, #tpu.memory_space<vmem>>, vector<128x256xbf16>
    %cst = arith.constant dense<0.000000e+00> : vector<8x256xf32>
    %2 = tpu.matmul %0, %1, %cst {dimension_numbers = #tpu.dot_dimension_numbers<[1], [0], [0], [1], [0, 0, 1, 1], [], []>} : vector<8x128xbf16>, vector<128x256xbf16>, vector<8x256xf32> -> vector<8x256xf32>
    %c0_3 = arith.constant 0 : index
    %c0_4 = arith.constant 0 : index
    %3 = vector.load %arg3[%c0_3, %c0_4] : memref<1x256xf32, #tpu.memory_space<vmem>>, vector<1x256xf32>
    %4 = vector.broadcast %3 : vector<1x256xf32> to vector<8x256xf32>
    %5 = arith.addf %2, %4 : vector<8x256xf32>
    %cst_5 = arith.constant 0.000000e+00 : f32
    %6 = vector.broadcast %cst_5 : f32 to vector<8x256xf32>
    %7 = arith.cmpf ogt, %5, %6 : vector<8x256xf32>
    %cst_6 = arith.constant 2.000000e-01 : f32
    %8 = vector.broadcast %cst_6 : f32 to vector<8x256xf32>
    %9 = arith.mulf %8, %5 : vector<8x256xf32>
    %10 = arith.select %7, %5, %9 : vector<8x256xi1>, vector<8x256xf32>
    %11 = arith.truncf %10 : vector<8x256xf32> to vector<8x256xbf16>
    %c0_7 = arith.constant 0 : index
    %c0_8 = arith.constant 0 : index
    %12 = vector.load %arg4[%c0_7, %c0_8] : memref<256x512xbf16, #tpu.memory_space<vmem>>, vector<256x512xbf16>
    %cst_9 = arith.constant dense<0.000000e+00> : vector<8x512xf32>
    %13 = tpu.matmul %11, %12, %cst_9 {dimension_numbers = #tpu.dot_dimension_numbers<[1], [0], [0], [1], [0, 0, 1, 1], [], []>} : vector<8x256xbf16>, vector<256x512xbf16>, vector<8x512xf32> -> vector<8x512xf32>
    %c0_10 = arith.constant 0 : index
    %c0_11 = arith.constant 0 : index
    %14 = vector.load %arg5[%c0_10, %c0_11] : memref<1x512xf32, #tpu.memory_space<vmem>>, vector<1x512xf32>
    %15 = vector.broadcast %14 : vector<1x512xf32> to vector<8x512xf32>
    %16 = arith.addf %13, %15 : vector<8x512xf32>
    %cst_12 = arith.constant 0.000000e+00 : f32
    %17 = vector.broadcast %cst_12 : f32 to vector<8x512xf32>
    %18 = arith.cmpf ogt, %16, %17 : vector<8x512xf32>
    %cst_13 = arith.constant 2.000000e-01 : f32
    %19 = vector.broadcast %cst_13 : f32 to vector<8x512xf32>
    %20 = arith.mulf %19, %16 : vector<8x512xf32>
    %21 = arith.select %18, %16, %20 : vector<8x512xi1>, vector<8x512xf32>
    %22 = arith.truncf %21 : vector<8x512xf32> to vector<8x512xbf16>
    %c0_14 = arith.constant 0 : index
    %c0_15 = arith.constant 0 : index
    %23 = vector.load %arg6[%c0_14, %c0_15] : memref<512x128xbf16, #tpu.memory_space<vmem>>, vector<512x128xbf16>
    %cst_16 = arith.constant dense<0.000000e+00> : vector<8x128xf32>
    %24 = tpu.matmul %22, %23, %cst_16 {dimension_numbers = #tpu.dot_dimension_numbers<[1], [0], [0], [1], [0, 0, 1, 1], [], []>} : vector<8x512xbf16>, vector<512x128xbf16>, vector<8x128xf32> -> vector<8x128xf32>
    %c0_17 = arith.constant 0 : index
    %c0_18 = arith.constant 0 : index
    %25 = vector.load %arg7[%c0_17, %c0_18] : memref<1x128xf32, #tpu.memory_space<vmem>>, vector<1x128xf32>
    %26 = vector.broadcast %25 : vector<1x128xf32> to vector<8x128xf32>
    %27 = arith.addf %24, %26 : vector<8x128xf32>
    %cst_19 = arith.constant dense<0xFF800000> : vector<8xf32>
    %28 = vector.multi_reduction <maximumf>, %27, %cst_19 [1] : vector<8x128xf32> to vector<8xf32>
    %29 = vector.shape_cast %28 : vector<8xf32> to vector<8x1xf32>
    %30 = vector.broadcast %29 : vector<8x1xf32> to vector<8x128xf32>
    %31 = arith.subf %27, %30 : vector<8x128xf32>
    %32 = math.exp %31 : vector<8x128xf32>
    %cst_20 = arith.constant dense<0.000000e+00> : vector<8xf32>
    %33 = vector.multi_reduction <add>, %32, %cst_20 [1] : vector<8x128xf32> to vector<8xf32>
    %34 = vector.shape_cast %33 : vector<8xf32> to vector<8x1xf32>
    %35 = tpu.reciprocal %34 {approx = true} : vector<8x1xf32> -> vector<8x1xf32>
    %36 = vector.broadcast %35 : vector<8x1xf32> to vector<8x128xf32>
    %37 = arith.mulf %32, %36 : vector<8x128xf32>
    %c0_21 = arith.constant 0 : index
    %c0_22 = arith.constant 0 : index
    %38 = vector.load %arg8[%c0_21, %c0_22] : memref<8x128xf32, #tpu.memory_space<vmem>>, vector<8x128xf32>
    tpu.vector_store %arg8[%c0_21, %c0_22], %37 {strides = array<i32>} : memref<8x128xf32, #tpu.memory_space<vmem>>, vector<8x128xf32>,
    return
  }
  func.func @transform_0(%arg0: i32) -> (i32, i32) {
    %c0_i32 = arith.constant 0 : i32
    %c0_i32_0 = arith.constant 0 : i32
    return %arg0, %c0_i32 : i32, i32
  }
  func.func @transform_1(%arg0: i32) -> (i32, i32) {
    %c0_i32 = arith.constant 0 : i32
    %c0_i32_0 = arith.constant 0 : i32
    %c0_i32_1 = arith.constant 0 : i32
    return %c0_i32, %c0_i32_0 : i32, i32
  }
  func.func @transform_2(%arg0: i32) -> (i32, i32) {
    %c0_i32 = arith.constant 0 : i32
    %c0_i32_0 = arith.constant 0 : i32
    %c0_i32_1 = arith.constant 0 : i32
    return %c0_i32, %c0_i32_0 : i32, i32
  }
  func.func @transform_3(%arg0: i32) -> (i32, i32) {
    %c0_i32 = arith.constant 0 : i32
    %c0_i32_0 = arith.constant 0 : i32
    %c0_i32_1 = arith.constant 0 : i32
    return %c0_i32, %c0_i32_0 : i32, i32
  }
  func.func @transform_4(%arg0: i32) -> (i32, i32) {
    %c0_i32 = arith.constant 0 : i32
    %c0_i32_0 = arith.constant 0 : i32
    %c0_i32_1 = arith.constant 0 : i32
    return %c0_i32, %c0_i32_0 : i32, i32
  }
  func.func @transform_5(%arg0: i32) -> (i32, i32) {
    %c0_i32 = arith.constant 0 : i32
    %c0_i32_0 = arith.constant 0 : i32
    %c0_i32_1 = arith.constant 0 : i32
    return %c0_i32, %c0_i32_0 : i32, i32
  }
  func.func @transform_6(%arg0: i32) -> (i32, i32) {
    %c0_i32 = arith.constant 0 : i32
    %c0_i32_0 = arith.constant 0 : i32
    %c0_i32_1 = arith.constant 0 : i32
    return %c0_i32, %c0_i32_0 : i32, i32
  }
  func.func @transform_7(%arg0: i32) -> (i32, i32) {
    %c0_i32 = arith.constant 0 : i32
    %c0_i32_0 = arith.constant 0 : i32
    return %arg0, %c0_i32 : i32, i32
  }
}

</mosaic_0001>

<bundles_post_ra>
// kernel: tpu_custom_call.1
= control target key start
LH: loop header
LB: loop body
LE: loop exit
PB: predicated region body
PF: predicated region fallthrough
CT: control target
= control target key end

     0   :  { %12 = vsyncpa [#allocation3], 0  ;;  %s1636_s0 = inlined_call_operand.hbm [shape: bf16[8,128], index: 0, kind: input, shape index: {}]   ;;  %s1637_s1 = inlined_call_operand.hbm [shape: bf16[128,256], index: 1, kind: input, shape index: {}]   ;;  %s1638_s2 = inlined_call_operand.vmem [shape: f32[1,256], index: 2, kind: input, shape index: {}]   ;;  %s1639_s3 = inlined_call_operand.hbm [shape: bf16[256,512], index: 3, kind: input, shape index: {}]   ;;  %s1640_s4 = inlined_call_operand.vmem [shape: f32[1,512], index: 4, kind: input, shape index: {}]   ;;  %s1641_s5 = inlined_call_operand.hbm [shape: bf16[512,128], index: 5, kind: input, shape index: {}]   ;;  %s1642_s6 = inlined_call_operand.vmem [shape: f32[1,128], index: 6, kind: input, shape index: {}]   ;;  %s1643_s7 = inlined_call_operand.hbm [shape: f32[8,128], index: 7, kind: output, shape index: {}]  }
   0x1   :  { %13 = vsyncpa [#allocation6], 0 }
   0x2   :  { %14 = vsyncpa [#allocation9], 0 }
   0x3   :  { %15 = vsyncpa [#allocation4], 0  ;;  %s1546_s24 = smov [#allocation5]  }
   0x4   :  { %s31_s25 = sshll.u32 %s1546_s24, 4  ;;  %s32_s25 = int_to_ptr.vmem [resolvable:$true] %s31_s25 }
   0x5   :  { %s1446_s26 = scalar_lea.vmem %s32_s25, 2048  ;;  %p1451_p1 = scmp.lt.s32.totalorder %s32_s25, %s32_s25 }
   0x6   :  { %p1447_p0 = scmp.ne.s32.totalorder %s32_s25, %s1446_s26  ;;  %p1452_p2 = scmp.lt.s32.totalorder %s1446_s26, %s1446_s26 }
   0x8   :  { %p1453_p3 = por %p1452_p2, %p1451_p1 }
   0xa   :  { %p1454_p4 = pnand %p1453_p3, %p1447_p0 }
   0xc   :  { %1457 = shalt.err (!%p1454_p4)
}
   0xd   :  { %s1547_s27 = smov 128   ;;  %s1548_s28 = smov 8  }
   0xe   :  { %37 = dma.hbm_to_vmem [thread:$0]  %s1637_s1, 2048, %s32_s25, [#allocation6], %s1547_s27, %s1547_s27, %s1548_s28  }
   0xf   :  { %s1549_s8 = smov [#allocation2]   ;;  %s1550_s10 = smov [#allocation7]  }
  0x10   :  { %s22_s9 = sshll.u32 %s1549_s8, 4  ;;  %s45_s11 = sshll.u32 %s1550_s10, 4  ;;  %s23_s9 = int_to_ptr.vmem [resolvable:$true] %s22_s9  ;;  %s46_s11 = int_to_ptr.vmem [resolvable:$true] %s45_s11 }
  0x11   :  { %s1466_s12 = scalar_lea.vmem %s23_s9, 64  ;;  %p1471_p6 = scmp.lt.s32.totalorder %s23_s9, %s23_s9 }
  0x12   :  { %p1467_p5 = scmp.ne.s32.totalorder %s23_s9, %s1466_s12  ;;  %p1472_p7 = scmp.lt.s32.totalorder %s1466_s12, %s1466_s12 }
  0x14   :  { %p1473_p8 = por %p1472_p7, %p1471_p6 }
  0x16   :  { %p1474_p9 = pnand %p1473_p8, %p1467_p5 }
  0x18   :  { %1477 = shalt.err (!%p1474_p9)
}
  0x19   :  { %25 = dma.hbm_to_vmem [thread:$0]  %s1636_s0, 64, %s23_s9, [#allocation3]  }
  0x1a   :  { %s1486_s15 = scalar_lea.vmem %s46_s11, 8192  ;;  %p1491_p11 = scmp.lt.s32.totalorder %s46_s11, %s46_s11 }
  0x1b   :  { %p1487_p10 = scmp.ne.s32.totalorder %s46_s11, %s1486_s15  ;;  %p1492_p12 = scmp.lt.s32.totalorder %s1486_s15, %s1486_s15 }
  0x1d   :  { %p1493_p13 = por %p1492_p12, %p1491_p11 }
  0x1f   :  { %p1494_p0 = pnand %p1493_p13, %p1487_p10 }
  0x21   :  { %1497 = shalt.err (!%p1494_p0)
}
  0x22   :  { %s1551_s1 = smov 256   ;;  %s1552_s16 = smov 16  }
  0x23   :  { %51 = dma.hbm_to_vmem [thread:$0]  %s1639_s3, 8192, %s46_s11, [#allocation6], %s1551_s1, %s1551_s1, %s1552_s16  }
  0x24   :  { %s1553_s19 = smov [#allocation8]  }
  0x25   :  { %s59_s20 = sshll.u32 %s1553_s19, 4  ;;  %s60_s20 = int_to_ptr.vmem [resolvable:$true] %s59_s20 }
  0x26   :  { %s1506_s21 = scalar_lea.vmem %s60_s20, 4096  ;;  %p1511_p2 = scmp.lt.s32.totalorder %s60_s20, %s60_s20 }
  0x27   :  { %p1507_p1 = scmp.ne.s32.totalorder %s60_s20, %s1506_s21  ;;  %p1512_p3 = scmp.lt.s32.totalorder %s1506_s21, %s1506_s21 }
  0x29   :  { %p1513_p4 = por %p1512_p3, %p1511_p2 }
  0x2b   :  { %p1514_p5 = pnand %p1513_p4, %p1507_p1 }
  0x2d   :  { %1517 = shalt.err (!%p1514_p5)
}
  0x2e   :  { %s1554_s0 = smov 64   ;;  %s1555_s22 = smov 4  }
  0x2f   :  { %65 = dma.hbm_to_vmem [thread:$0]  %s1641_s5, 4096, %s60_s20, [#allocation9], %s1554_s0, %s1554_s0, %s1555_s22  }
  0x30   :  { %1538 = dma.done.wait [#allocation3], 64  }
  0x31   :  { %1539 = vsyncadd [#allocation3], 4294967232 }
  0x32   :  { %1540 = dma.done.wait [#allocation6], 10240  }
  0x33   :  { %1541 = vsyncadd [#allocation6], 4294957056 }
  0x34   :  { %1542 = dma.done.wait [#allocation9], 4096  }
  0x35   :  { %1543 = vsyncadd [#allocation9], 4294963200  ;;  %v1556_v0 = vmov 0   ;;  %v1282_v1 = vld [vmem:[#allocation5 + $0x74] ss:$8 sps:$4 sm:$0xff]  }
  0x36   :  { %222 = vmatprep.mubr.bf16.mxu0 %v1556_v0  ;;  %v1284_v2 = vld [vmem:[#allocation5 + $0x70] ss:$8 sps:$4 sm:$0xff]   ;;  %190 = vmatprep.subr.bf16.mxu0 %v1282_v1  ;;  %v1285_v3 = vld [vmem:[#allocation5 + $0x64] ss:$8 sps:$4 sm:$0xff]   ;;  %v1287_v4 = vld [vmem:[#allocation5 + $0x60] ss:$8 sps:$4 sm:$0xff]  }
  0x37   :  { %191 = vmatpush1.bf16.msra.mxu0 %v1284_v2  ;;  %v1288_v5 = vld [vmem:[#allocation5 + $0x54] ss:$8 sps:$4 sm:$0xff]   ;;  %v1290_v6 = vld [vmem:[#allocation5 + $0x50] ss:$8 sps:$4 sm:$0xff]   ;;  %v1291_v7 = vld [vmem:[#allocation5 + $0x44] ss:$8 sps:$4 sm:$0xff]  }
  0x38   :  { %192 = vmatprep.subr.bf16.mxu0 %v1285_v3  ;;  %v1293_v8 = vld [vmem:[#allocation5 + $0x40] ss:$8 sps:$4 sm:$0xff]   ;;  %v1306_v9 = vld [vmem:[#allocation7 + $0xe4] ss:$16 sps:$4 sm:$0xff]   ;;  %v1296_v13 = vld [vmem:[#allocation5 + $0x30] ss:$8 sps:$4 sm:$0xff]  }
  0x39   :  { %v1294_v10 = vld [vmem:[#allocation5 + $0x34] ss:$8 sps:$4 sm:$0xff]   ;;  %645 = vmatprep.subr.bf16.mxu1 %v1306_v9  ;;  %v1311_v11 = vld [vmem:[#allocation7 + $0xe0] ss:$16 sps:$4 sm:$0xff]   ;;  %v1297_v14 = vld [vmem:[#allocation5 + $0x24] ss:$8 sps:$4 sm:$0xff]  }
  0x3a   :  { %v1312_v12 = vld [vmem:[#allocation7 + $0xc4] ss:$16 sps:$4 sm:$0xff]   ;;  %646 = vmatpush1.bf16.msra.mxu1 %v1311_v11  ;;  %v1317_v15 = vld [vmem:[#allocation7 + $0xc0] ss:$16 sps:$4 sm:$0xff]   ;;  %v1310_v26 = vld [vmem:[#allocation7 + $0xec] ss:$16 sps:$4 sm:$0xff]  }
  0x3b   :  { %193 = vmatpush1.bf16.msra.mxu0 %v1287_v4  ;;  %647 = vmatprep.subr.bf16.mxu1 %v1312_v12  ;;  %v1318_v16 = vld [vmem:[#allocation7 + $0xa4] ss:$16 sps:$4 sm:$0xff]   ;;  %v1299_v17 = vld [vmem:[#allocation5 + $0x20] ss:$8 sps:$4 sm:$0xff]   ;;  %v1302_v21 = vld [vmem:[#allocation5 + $0x10] ss:$8 sps:$4 sm:$0xff]  }
  0x3c   :  { %194 = vmatprep.subr.bf16.mxu0 %v1288_v5  ;;  %v1300_v18 = vld [vmem:[#allocation5 + $0x14] ss:$8 sps:$4 sm:$0xff]   ;;  %v1323_v19 = vld [vmem:[#allocation7 + $0xa0] ss:$16 sps:$4 sm:$0xff]   ;;  %v1303_v22 = vld [vmem:[#allocation5 + $0x4] ss:$8 sps:$4 sm:$0xff]  }
  0x3d   :  { %v1324_v20 = vld [vmem:[#allocation7 + $0x84] ss:$16 sps:$4 sm:$0xff]   ;;  %v1329_v23 = vld [vmem:[#allocation7 + $0x80] ss:$16 sps:$4 sm:$0xff]   ;;  %v81_v29 = vld [vmem:[#allocation2] sm:$0xf] }
  0x3e   :  { %648 = vmatpush1.bf16.msra.mxu1 %v1317_v15  ;;  %v1330_v24 = vld [vmem:[#allocation7 + $0x64] ss:$16 sps:$4 sm:$0xff]   ;;  %v1305_v25 = vld [vmem:[#allocation5] ss:$8 sps:$4 sm:$0xff]   ;;  %v1316_v31 = vld [vmem:[#allocation7 + $0xcc] ss:$16 sps:$4 sm:$0xff]  }
  0x3f   :  { %195 = vmatpush1.bf16.msra.mxu0 %v1290_v6  ;;  %649 = vmatprep.subr.bf16.mxu1 %v1318_v16  ;;  %v1335_v27 = vld [vmem:[#allocation7 + $0x60] ss:$16 sps:$4 sm:$0xff]   ;;  %v1336_v28 = vld [vmem:[#allocation7 + $0x44] ss:$16 sps:$4 sm:$0xff]   ;;  %v1308_v30 = vld [vmem:[#allocation7 + $0xe8] ss:$16 sps:$4 sm:$0xff]  }
  0x40   :  { %196 = vmatprep.subr.bf16.mxu0 %v1291_v7  ;;  %v1341_v32 = vld [vmem:[#allocation7 + $0x40] ss:$16 sps:$4 sm:$0xff]   ;;  %v1342_v33 = vld [vmem:[#allocation7 + $0x24] ss:$16 sps:$4 sm:$0xff]   ;;  %v1314_v34 = vld [vmem:[#allocation7 + $0xc8] ss:$16 sps:$4 sm:$0xff]  }
  0x41   :  { %v1322_v35 = vld [vmem:[#allocation7 + $0xac] ss:$16 sps:$4 sm:$0xff]   ;;  %v1347_v36 = vld [vmem:[#allocation7 + $0x20] ss:$16 sps:$4 sm:$0xff]   ;;  %v1348_v37 = vld [vmem:[#allocation7 + $0x4] ss:$16 sps:$4 sm:$0xff]  }
  0x42   :  { %650 = vmatpush1.bf16.msra.mxu1 %v1323_v19  ;;  %v1320_v38 = vld [vmem:[#allocation7 + $0xa8] ss:$16 sps:$4 sm:$0xff]   ;;  %v1328_v39 = vld [vmem:[#allocation7 + $0x8c] ss:$16 sps:$4 sm:$0xff]   ;;  %v1353_v40 = vld [vmem:[#allocation7] ss:$16 sps:$4 sm:$0xff]  }
  0x43   :  { %197 = vmatpush1.bf16.msra.mxu0 %v1293_v8  ;;  %651 = vmatprep.subr.bf16.mxu1 %v1324_v20  ;;  %v1354_v41 = vld [vmem:[#allocation7 + $0x1e4] ss:$16 sps:$4 sm:$0xff]   ;;  %v1326_v42 = vld [vmem:[#allocation7 + $0x88] ss:$16 sps:$4 sm:$0xff]   ;;  %v1334_v43 = vld [vmem:[#allocation7 + $0x6c] ss:$16 sps:$4 sm:$0xff]   ;;  %v100_v20 = vlaneseq }
  0x44   :  { %198 = vmatprep.subr.bf16.mxu0 %v1294_v10  ;;  %v1359_v44 = vld [vmem:[#allocation7 + $0x1e0] ss:$16 sps:$4 sm:$0xff]   ;;  %v1360_v45 = vld [vmem:[#allocation7 + $0x1c4] ss:$16 sps:$4 sm:$0xff]   ;;  %v1332_v46 = vld [vmem:[#allocation7 + $0x68] ss:$16 sps:$4 sm:$0xff]  }
  0x45   :  { %v1340_v47 = vld [vmem:[#allocation7 + $0x4c] ss:$16 sps:$4 sm:$0xff]   ;;  %v1365_v48 = vld [vmem:[#allocation7 + $0x1c0] ss:$16 sps:$4 sm:$0xff]   ;;  %v1366_v49 = vld [vmem:[#allocation7 + $0x1a4] ss:$16 sps:$4 sm:$0xff]  }
  0x46   :  { %652 = vmatpush1.bf16.msra.mxu1 %v1329_v23  ;;  %v1338_v50 = vld [vmem:[#allocation7 + $0x48] ss:$16 sps:$4 sm:$0xff]   ;;  %v1371_v51 = vld [vmem:[#allocation7 + $0x1a0] ss:$16 sps:$4 sm:$0xff]   ;;  %v1346_v52 = vld [vmem:[#allocation7 + $0x2c] ss:$16 sps:$4 sm:$0xff]  }
  0x47   :  { %199 = vmatpush1.bf16.msra.mxu0 %v1296_v13  ;;  %653 = vmatprep.subr.bf16.mxu1 %v1330_v24  ;;  %v1372_v53 = vld [vmem:[#allocation7 + $0x184] ss:$16 sps:$4 sm:$0xff]   ;;  %v1344_v54 = vld [vmem:[#allocation7 + $0x28] ss:$16 sps:$4 sm:$0xff]   ;;  %v1377_v55 = vld [vmem:[#allocation7 + $0x180] ss:$16 sps:$4 sm:$0xff]  }
  0x48   :  { %200 = vmatprep.subr.bf16.mxu0 %v1297_v14  ;;  %v1352_v56 = vld [vmem:[#allocation7 + $0xc] ss:$16 sps:$4 sm:$0xff]   ;;  %v1378_v57 = vld [vmem:[#allocation7 + $0x164] ss:$16 sps:$4 sm:$0xff]   ;;  %v1350_v58 = vld [vmem:[#allocation7 + $0x8] ss:$16 sps:$4 sm:$0xff]  }
  0x49   :  { %v1383_v59 = vld [vmem:[#allocation7 + $0x160] ss:$16 sps:$4 sm:$0xff]   ;;  %v1358_v60 = vld [vmem:[#allocation7 + $0x1ec] ss:$16 sps:$4 sm:$0xff]   ;;  %v1384_v61 = vld [vmem:[#allocation7 + $0x144] ss:$16 sps:$4 sm:$0xff]  }
  0x4a   :  { %654 = vmatpush1.bf16.msra.mxu1 %v1335_v27  ;;  %v1356_v62 = vld [vmem:[#allocation7 + $0x1e8] ss:$16 sps:$4 sm:$0xff]   ;;  %v1364_v63 = vld [vmem:[#allocation7 + $0x1cc] ss:$16 sps:$4 sm:$0xff]   ;;  %v1389_v9 = vld [vmem:[#allocation7 + $0x140] ss:$16 sps:$4 sm:$0xff]  }
  0x4b   :  { %201 = vmatpush1.bf16.msra.mxu0 %v1299_v17  ;;  %655 = vmatprep.subr.bf16.mxu1 %v1336_v28  ;;  %v1362_v0 = vld [vmem:[#allocation7 + $0x1c8] ss:$16 sps:$4 sm:$0xff]   ;;  %v1370_v1 = vld [vmem:[#allocation7 + $0x1ac] ss:$16 sps:$4 sm:$0xff]   ;;  %v1390_v10 = vld [vmem:[#allocation7 + $0x124] ss:$16 sps:$4 sm:$0xff]  }
  0x4c   :  { %202 = vmatprep.subr.bf16.mxu0 %v1300_v18  ;;  %v1368_v2 = vld [vmem:[#allocation7 + $0x1a8] ss:$16 sps:$4 sm:$0xff]   ;;  %v1376_v3 = vld [vmem:[#allocation7 + $0x18c] ss:$16 sps:$4 sm:$0xff]   ;;  %v1395_v13 = vld [vmem:[#allocation7 + $0x120] ss:$16 sps:$4 sm:$0xff]  }
  0x4d   :  { %v1374_v4 = vld [vmem:[#allocation7 + $0x188] ss:$16 sps:$4 sm:$0xff]   ;;  %v1382_v5 = vld [vmem:[#allocation7 + $0x16c] ss:$16 sps:$4 sm:$0xff]   ;;  %v1396_v14 = vld [vmem:[#allocation7 + $0x104] ss:$16 sps:$4 sm:$0xff]  }
  0x4e   :  { %656 = vmatpush1.bf16.msra.mxu1 %v1341_v32  ;;  %v1380_v6 = vld [vmem:[#allocation7 + $0x168] ss:$16 sps:$4 sm:$0xff]   ;;  %v1388_v7 = vld [vmem:[#allocation7 + $0x14c] ss:$16 sps:$4 sm:$0xff]   ;;  %v1401_v17 = vld [vmem:[#allocation7 + $0x100] ss:$16 sps:$4 sm:$0xff]  }
  0x4f   :  { %203 = vmatpush1.bf16.msra.mxu0 %v1302_v21  ;;  %657 = vmatprep.subr.bf16.mxu1 %v1342_v33  ;;  %v1386_v8 = vld [vmem:[#allocation7 + $0x148] ss:$16 sps:$4 sm:$0xff]   ;;  %v1394_v11 = vld [vmem:[#allocation7 + $0x12c] ss:$16 sps:$4 sm:$0xff]   ;;  %v1610_v21 = vshrl.u32 %v100_v20, 7 }
  0x50   :  { %204 = vmatprep.subr.bf16.mxu0 %v1303_v22  ;;  %v1392_v12 = vld [vmem:[#allocation7 + $0x128] ss:$16 sps:$4 sm:$0xff]   ;;  %v1400_v15 = vld [vmem:[#allocation7 + $0x10c] ss:$16 sps:$4 sm:$0xff]  }
  0x51   :  { %v1398_v16 = vld [vmem:[#allocation7 + $0x108] ss:$16 sps:$4 sm:$0xff]   ;;  %v102_v22 = vsub.s32 0, %v1610_v21  ;;  %v98_v23 = vld [vmem:[%s1638_s2] sm:$0x3]  ;;  %v106_v24 = vsub.s32 1, %v1610_v21 }
  0x52   :  { %658 = vmatpush1.bf16.msra.mxu1 %v1347_v36  ;;  %v1402_v18 = vld [vmem:[#allocation8 + $0x78] sm:$0xff]  }
  0x53   :  { %205 = vmatpush1.bf16.msra.mxu0 %v1305_v25  ;;  %659 = vmatprep.subr.bf16.mxu1 %v1348_v37  ;;  %v1403_v19 = vld [vmem:[#allocation8 + $0xf8] sm:$0xff]   ;;  %v103_v25 = vrot.slane %v98_v23, %v102_v22 }
  0x54   :  { %686 = vmatprep.subr.bf16.mxu0 %v1310_v26  ;;  %v107_v26 = vrot.slane %v98_v23, %v106_v24 }
  0x56   :  { %223 = vmatmul.mubr.bf16.vlgmr.msra.gmra.mxu0 %v81_v29  ;;  %660 = vmatpush1.bf16.msra.mxu1 %v1353_v40 }
  0x57   :  { %687 = vmatpush1.bf16.msra.mxu0 %v1308_v30  ;;  %661 = vmatprep.subr.bf16.mxu1 %v1354_v41  ;;  %v1406_v41 = vld [vmem:[#allocation8 + $0x70] sm:$0xff]  }
  0x58   :  { %688 = vmatprep.subr.bf16.mxu0 %v1316_v31 }
  0x5a   :  { %662 = vmatpush2.bf16.msra.mxu1 %v1359_v44  ;;  %v1409_v44 = vld [vmem:[#allocation8 + $0xb0] sm:$0xff]  }
  0x5b   :  { %689 = vmatpush1.bf16.msra.mxu0 %v1314_v34  ;;  %663 = vmatprep.subr.bf16.mxu1 %v1360_v45  ;;  %v1410_v45 = vld [vmem:[#allocation8 + $0x68] sm:$0xff]  }
  0x5c   :  { %690 = vmatprep.subr.bf16.mxu0 %v1322_v35 }
  0x5e   :  { %664 = vmatpush2.bf16.msra.mxu1 %v1365_v48  ;;  %v1413_v48 = vld [vmem:[#allocation8 + $0xa8] sm:$0xff]  }
  0x5f   :  { %691 = vmatpush1.bf16.msra.mxu0 %v1320_v38  ;;  %665 = vmatprep.subr.bf16.mxu1 %v1366_v49  ;;  %v1404_v38 = vld [vmem:[#allocation8 + $0x38] sm:$0xff]   ;;  %v1414_v49 = vld [vmem:[#allocation8 + $0x60] sm:$0xff]  }
  0x60   :  { %692 = vmatprep.subr.bf16.mxu0 %v1328_v39  ;;  %v1405_v39 = vld [vmem:[#allocation8 + $0xb8] sm:$0xff]  }
  0x62   :  { %666 = vmatpush2.bf16.msra.mxu1 %v1371_v51  ;;  %v1416_v51 = vld [vmem:[#allocation8 + $0x20] sm:$0xff]  }
  0x63   :  { %693 = vmatpush1.bf16.msra.mxu0 %v1326_v42  ;;  %667 = vmatprep.subr.bf16.mxu1 %v1372_v53  ;;  %v1407_v42 = vld [vmem:[#allocation8 + $0xf0] sm:$0xff]   ;;  %v1418_v53 = vld [vmem:[#allocation8 + $0x58] sm:$0xff]  }
  0x64   :  { %694 = vmatprep.subr.bf16.mxu0 %v1334_v43  ;;  %v1408_v43 = vld [vmem:[#allocation8 + $0x30] sm:$0xff]  }
  0x66   :  { %668 = vmatpush2.bf16.msra.mxu1 %v1377_v55  ;;  %v1420_v55 = vld [vmem:[#allocation8 + $0x18] sm:$0xff]  }
  0x67   :  { %695 = vmatpush1.bf16.msra.mxu0 %v1332_v46  ;;  %669 = vmatprep.subr.bf16.mxu1 %v1378_v57  ;;  %v1411_v46 = vld [vmem:[#allocation8 + $0xe8] sm:$0xff]   ;;  %v1422_v57 = vld [vmem:[#allocation8 + $0x50] sm:$0xff]  }
  0x68   :  { %696 = vmatprep.subr.bf16.mxu0 %v1340_v47  ;;  %v1412_v47 = vld [vmem:[#allocation8 + $0x28] sm:$0xff]  }
  0x6a   :  { %670 = vmatpush2.bf16.msra.mxu1 %v1383_v59  ;;  %v1424_v59 = vld [vmem:[#allocation8 + $0x10] sm:$0xff]  }
  0x6b   :  { %697 = vmatpush1.bf16.msra.mxu0 %v1338_v50  ;;  %671 = vmatprep.subr.bf16.mxu1 %v1384_v61  ;;  %v1415_v50 = vld [vmem:[#allocation8 + $0xe0] sm:$0xff]   ;;  %v1426_v61 = vld [vmem:[#allocation8 + $0x48] sm:$0xff]  }
  0x6c   :  { %698 = vmatprep.subr.bf16.mxu0 %v1346_v52  ;;  %v1417_v52 = vld [vmem:[#allocation8 + $0xa0] sm:$0xff]  }
  0x6e   :  { %672 = vmatpush2.bf16.msra.mxu1 %v1389_v9 }
  0x6f   :  { %699 = vmatpush1.bf16.msra.mxu0 %v1344_v54  ;;  %673 = vmatprep.subr.bf16.mxu1 %v1390_v10  ;;  %v1419_v54 = vld [vmem:[#allocation8 + $0xd8] sm:$0xff]  }
  0x70   :  { %700 = vmatprep.subr.bf16.mxu0 %v1352_v56  ;;  %v1421_v56 = vld [vmem:[#allocation8 + $0x98] sm:$0xff]  }
  0x72   :  { %674 = vmatpush2.bf16.msra.mxu1 %v1395_v13 }
  0x73   :  { %701 = vmatpush1.bf16.msra.mxu0 %v1350_v58  ;;  %675 = vmatprep.subr.bf16.mxu1 %v1396_v14  ;;  %v1423_v58 = vld [vmem:[#allocation8 + $0xd0] sm:$0xff]  }
  0x74   :  { %702 = vmatprep.subr.bf16.mxu0 %v1358_v60  ;;  %v1425_v60 = vld [vmem:[#allocation8 + $0x90] sm:$0xff]  }
  0x76   :  { %676 = vmatpush2.bf16.msra.mxu1 %v1401_v17 }
  0x77   :  { %703 = vmatpush2.bf16.msra.mxu0 %v1356_v62  ;;  %1226 = vmatprep.subr.bf16.mxu1 %v1402_v18  ;;  %v1427_v62 = vld [vmem:[#allocation8 + $0xc8] sm:$0xff]  }
  0x78   :  { %704 = vmatprep.subr.bf16.mxu0 %v1364_v63  ;;  %v1428_v63 = vld [vmem:[#allocation8 + $0x8] sm:$0xff]  }
  0x7b   :  { %705 = vmatpush2.bf16.msra.mxu0 %v1362_v0  ;;  %v1429_v0 = vld [vmem:[#allocation8 + $0x88] sm:$0xff]  }
  0x7c   :  { %706 = vmatprep.subr.bf16.mxu0 %v1370_v1  ;;  %v1430_v1 = vld [vmem:[#allocation8 + $0x40] sm:$0xff]  }
  0x7f   :  { %707 = vmatpush2.bf16.msra.mxu0 %v1368_v2  ;;  %v1431_v2 = vld [vmem:[#allocation8 + $0xc0] sm:$0xff]  }
  0x80   :  { %708 = vmatprep.subr.bf16.mxu0 %v1376_v3  ;;  %v1432_v3 = vld [vmem:[#allocation8] sm:$0xff]  }
  0x83   :  { %709 = vmatpush2.bf16.msra.mxu0 %v1374_v4  ;;  %v1433_v4 = vld [vmem:[#allocation8 + $0x80] sm:$0xff]  }
  0x84   :  { %710 = vmatprep.subr.bf16.mxu0 %v1382_v5  ;;  %v315_v5 = vsub.s32 2, %v1610_v21 }
  0x87   :  { %711 = vmatpush2.bf16.msra.mxu0 %v1380_v6  ;;  %v303_v6 = vld [vmem:[%s1640_s4] sm:$0xf] }
  0x88   :  { %712 = vmatprep.subr.bf16.mxu0 %v1388_v7  ;;  %v319_v7 = vsub.s32 3, %v1610_v21  ;;  %v316_v9 = vrot.slane %v303_v6, %v315_v5 }
  0x8a   :  { %v320_v13 = vrot.slane %v303_v6, %v319_v7 }
  0x8b   :  { %713 = vmatpush2.bf16.msra.mxu0 %v1386_v8  ;;  %v308_v8 = vrot.slane %v303_v6, %v102_v22 }
  0x8c   :  { %714 = vmatprep.subr.bf16.mxu0 %v1394_v11 }
  0x8f   :  { %715 = vmatpush2.bf16.msra.mxu0 %v1392_v12  ;;  %v312_v12 = vrot.slane %v303_v6, %v106_v24 }
  0x90   :  { %716 = vmatprep.subr.bf16.mxu0 %v1400_v15 }
  0x93   :  { %717 = vmatpush2.bf16.msra.mxu0 %v1398_v16 }
  0x94   :  { %1248 = vmatprep.subr.bf16.mxu0 %v1403_v19 }
 0x116   :  { %v224_v27 = vpop.f32.mrf.mxu0 }
 0x117   :  { %v225_v28 = vadd.f32 %v224_v27, %v103_v25 }
 0x118   :  { %v226_v29 = vpop.f32.mrf.mxu0 }
 0x119   :  { %vm231_vm0 = vcmp.gt.f32.partialorder %v225_v28, 0.0  ;;  %v233_v30 = vmul.f32 0.2, %v225_v28  ;;  %v227_v31 = vadd.f32 %v226_v29, %v107_v26 }
 0x11a   :  { %v228_v32 = vpop.f32.mrf.mxu0 }
 0x11b   :  { %v234_v33 = vmul.f32 0.2, %v227_v31  ;;  %vm232_vm1 = vcmp.gt.f32.partialorder %v227_v31, 0.0  ;;  %v235_v35 = vsel %vm231_vm0, %v225_v28, %v233_v30 }
 0x11c   :  { %v229_v34 = vpop.f32.mrf.mxu0  ;;  %v237_v40 = vpack.c.bf16 %v235_v35, %v235_v35 }
 0x11d   :  { %v236_v36 = vsel %vm232_vm1, %v227_v31, %v234_v33 }
 0x11e   :  { %v238_v37 = vpack.c.bf16 %v236_v36, %v236_v36 }
 0x120   :  { %677 = vmatprep.mubr.bf16.mxu1 %v238_v37  ;;  %718 = vmatprep.mubr.bf16.mxu0 %v238_v37 }
 0x121   :  { %678 = vmatmul.mubr.bf16.vlgmr.msra.gmra.mxu1 %v237_v40  ;;  %719 = vmatmul.mubr.bf16.vlgmr.msra.gmra.mxu0 %v237_v40 }
 0x122   :  { %1227 = vmatpush3.bf16.msra.mxu1 %v1404_v38  ;;  %1249 = vmatpush3.bf16.msra.mxu0 %v1405_v39  ;;  %v1193_v38 = vld [vmem:[%s1642_s6] ss:$0 sm:$0xff]  ;;  %s1557_s6 = smov [#allocation10]  }
 0x123   :  { %1228 = vmatprep.subr.bf16.mxu1 %v1406_v41  ;;  %1250 = vmatprep.subr.bf16.mxu0 %v1407_v42  ;;  %s1102_s27 = sshll.u32 %s1557_s6, 4  ;;  %s1103_s27 = int_to_ptr.vmem [resolvable:$true] %s1102_s27 }
 0x124   :  { %s1518_s28 = scalar_lea.vmem %s1103_s27, 128  ;;  %p1523_p7 = scmp.lt.s32.totalorder %s1103_s27, %s1103_s27 }
 0x125   :  { %p1519_p6 = scmp.ne.s32.totalorder %s1103_s27, %s1518_s28  ;;  %p1524_p8 = scmp.lt.s32.totalorder %s1518_s28, %s1518_s28 }
 0x126   :  { %1229 = vmatpush3.bf16.msra.mxu1 %v1408_v43  ;;  %1251 = vmatpush3.bf16.msra.mxu0 %v1409_v44 }
 0x127   :  { %1230 = vmatprep.subr.bf16.mxu1 %v1410_v45  ;;  %1252 = vmatprep.subr.bf16.mxu0 %v1411_v46  ;;  %p1525_p9 = por %p1524_p8, %p1523_p7 }
 0x129   :  { %p1526_p10 = pnand %p1525_p9, %p1519_p6 }
 0x12a   :  { %1231 = vmatpush3.bf16.msra.mxu1 %v1412_v47  ;;  %1253 = vmatpush3.bf16.msra.mxu0 %v1413_v48 }
 0x12b   :  { %1232 = vmatprep.subr.bf16.mxu1 %v1414_v49  ;;  %1254 = vmatprep.subr.bf16.mxu0 %v1415_v50 }
 0x12e   :  { %1233 = vmatpush3.bf16.msra.mxu1 %v1416_v51  ;;  %1255 = vmatpush3.bf16.msra.mxu0 %v1417_v52 }
 0x12f   :  { %1234 = vmatprep.subr.bf16.mxu1 %v1418_v53  ;;  %1256 = vmatprep.subr.bf16.mxu0 %v1419_v54 }
 0x132   :  { %1235 = vmatpush3.bf16.msra.mxu1 %v1420_v55  ;;  %1257 = vmatpush3.bf16.msra.mxu0 %v1421_v56 }
 0x133   :  { %1236 = vmatprep.subr.bf16.mxu1 %v1422_v57  ;;  %1258 = vmatprep.subr.bf16.mxu0 %v1423_v58 }
 0x136   :  { %1237 = vmatpush3.bf16.msra.mxu1 %v1424_v59  ;;  %1259 = vmatpush3.bf16.msra.mxu0 %v1425_v60 }
 0x137   :  { %1238 = vmatprep.subr.bf16.mxu1 %v1426_v61  ;;  %1260 = vmatprep.subr.bf16.mxu0 %v1427_v62 }
 0x13a   :  { %1239 = vmatpush3.bf16.msra.mxu1 %v1428_v63  ;;  %1261 = vmatpush3.bf16.msra.mxu0 %v1429_v0 }
 0x13b   :  { %1240 = vmatprep.subr.bf16.mxu1 %v1430_v1  ;;  %1262 = vmatprep.subr.bf16.mxu0 %v1431_v2 }
 0x13e   :  { %1241 = vmatpush3.bf16.msra.mxu1 %v1432_v3  ;;  %1263 = vmatpush3.bf16.msra.mxu0 %v1433_v4 }
 0x1e1   :  { %v679_v10 = vpop.f32.mrf.mxu1  ;;  %v720_v11 = vpop.f32.mrf.mxu0 }
 0x1e2   :  { %v680_v14 = vadd.f32 %v679_v10, %v308_v8  ;;  %v721_v15 = vadd.f32 %v720_v11, %v316_v9 }
 0x1e3   :  { %v681_v16 = vpop.f32.mrf.mxu1  ;;  %v722_v17 = vpop.f32.mrf.mxu0 }
 0x1e4   :  { %v731_v18 = vmul.f32 0.2, %v680_v14  ;;  %vm727_vm2 = vcmp.gt.f32.partialorder %v680_v14, 0.0  ;;  %v733_v19 = vmul.f32 0.2, %v721_v15  ;;  %v682_v20 = vadd.f32 %v681_v16, %v312_v12 }
 0x1e5   :  { %v723_v23 = vadd.f32 %v722_v17, %v320_v13  ;;  %v683_v25 = vpop.f32.mrf.mxu1  ;;  %v724_v26 = vpop.f32.mrf.mxu0  ;;  %vm729_vm3 = vcmp.gt.f32.partialorder %v721_v15, 0.0 }
 0x1e6   :  { %vm728_vm4 = vcmp.gt.f32.partialorder %v682_v20, 0.0  ;;  %v732_v22 = vmul.f32 0.2, %v682_v20  ;;  %v735_v29 = vsel %vm727_vm2, %v680_v14, %v731_v18  ;;  %v737_v24 = vsel %vm729_vm3, %v721_v15, %v733_v19 }
 0x1e7   :  { %v684_v27 = vpop.f32.mrf.mxu1  ;;  %v725_v28 = vpop.f32.mrf.mxu0  ;;  %vm730_vm5 = vcmp.gt.f32.partialorder %v723_v23, 0.0  ;;  %v734_v21 = vmul.f32 0.2, %v723_v23  ;;  %v739_v33 = vpack.c.bf16 %v735_v29, %v735_v29  ;;  %v741_v35 = vpack.c.bf16 %v737_v24, %v737_v24 }
 0x1e8   :  { %v736_v30 = vsel %vm728_vm4, %v682_v20, %v732_v22 }
 0x1e9   :  { %v740_v31 = vpack.c.bf16 %v736_v30, %v736_v30  ;;  %v738_v32 = vsel %vm730_vm5, %v723_v23, %v734_v21 }
 0x1ea   :  { %v742_v34 = vpack.c.bf16 %v738_v32, %v738_v32 }
 0x1eb   :  { %1038 = vmatprep.mubr.bf16.mxu1 %v740_v31 }
 0x1ec   :  { %1078 = vmatprep.mubr.bf16.mxu0 %v742_v34  ;;  %1039 = vmatmul.mubr.bf16.vlgmr.msra.gmra.mxu1 %v739_v33 }
 0x1ed   :  { %1079 = vmatmul.mubr.bf16.vlgmr.msra.gmra.mxu0 %v741_v35 }
 0x2ac   :  { %v1242_v36 = vpop.f32.mrf.mxu1 }
 0x2ad   :  { %v1264_v37 = vpop.f32.mrf.mxu0 }
 0x2ae   :  { %v1243_v39 = vpop.f32.mrf.mxu1 }
 0x2af   :  { %v1244_v40 = vadd.f32 %v1243_v39, %v1242_v36  ;;  %v1265_v41 = vpop.f32.mrf.mxu0 }
 0x2b0   :  { %v1245_v42 = vpop.f32.mrf.mxu1  ;;  %v1266_v44 = vadd.f32 %v1265_v41, %v1264_v37 }
 0x2b1   :  { %v1041_v43 = vadd.f32 %v1244_v40, %v1193_v38  ;;  %v1267_v45 = vpop.f32.mrf.mxu0 }
 0x2b2   :  { %v1246_v46 = vpop.f32.mrf.mxu1 }
 0x2b3   :  { %v1268_v47 = vpop.f32.mrf.mxu0  ;;  %v1081_v48 = vadd.f32 %v1266_v44, %v1041_v43 }
 0x2b5   :  { %1086 = vmax.xlane.f32.xlu0 %v1081_v48 }
 0x33e   :  { %v1087_v49 = vpop.xlane.xlu0 %1086 }
 0x33f   :  { %v1088_v50 = vsub.f32 %v1081_v48, %v1087_v49 }
 0x341   :  { %v1089_v51 = vmul.f32 1.442695, %v1088_v50 }
 0x343   :  { %1434 = vpow2.f32 %v1089_v51 }
 0x350   :  { %v1435_v52 = vpop.eup %1434 }
 0x351   :  { %1091 = vadd.xlane.f32.xlu0 %v1435_v52 }
 0x3da   :  { %v1092_v53 = vpop.xlane.xlu0 %1091 }
 0x3db   :  { %1436 = vrcp.f32 %v1092_v53 }
 0x3e8   :  { %v1437_v54 = vpop.eup %1436 }
 0x3e9   :  { %v1094_v55 = vmul.f32 %v1437_v54, %v1435_v52 }
 0x3eb   :  { %1095 = vst [vmem:[#allocation10] sm:$0xff] %v1094_v55 }
 0x3ec   :  { %1529 = shalt.err (!%p1526_p10)
}
 0x3ed   :  { %1105 = dma.vmem_to_hbm [thread:$0]  %s1103_s27, 128, %s1643_s7, [#allocation4]  }
 0x3ee   :  { %1544 = dma.done.wait [#allocation4], 128  }
 0x3ef   :  { %1545 = vsyncadd [#allocation4], 4294967168 }
 0x3f0   :  { %1109 = vsyncpa [#allocation3], 1 }
 0x3f1   :  { %1110 = vsyncpa [#allocation6], 1 }
 0x3f2   :  { %1111 = vsyncpa [#allocation9], 1 }
 0x3f3   :  { %1112 = vsyncpa [#allocation4], 1 }

</bundles_post_ra>
